<compile_context>
chip_gen: v6e
topology: v6e:2x2x1
jax: 0.10.0
libtpu: 0.0.40
codegen_flags: <defaults>
</compile_context>

<pallas_src>
import functools
import math

import jax
import jax.numpy as jnp
from jax.experimental import pallas as pl
from jax.experimental.pallas import tpu as pltpu


def _round_up(x: int, m: int) -> int:
    return ((x + m - 1) // m) * m


def _rbf_constants(num_rbf: int, soft_cutoff_upper: float):
    """Scalar constants identical to rbf_emb._initial_params() (buffers are not trained)."""
    upper = float(soft_cutoff_upper)
    start_value = math.exp(-upper)      # exp(-soft_cutoff_upper)
    end_value = math.exp(-0.0)          # soft_cutoff_lower == 0  -> 1.0
    # torch.linspace(start, end, n) == start + k * step
    mean_step = (end_value - start_value) / (num_rbf - 1) if num_rbf > 1 else 0.0
    beta = (2.0 / num_rbf * (end_value - start_value)) ** (-2)
    return start_value, mean_step, beta


def _rbf_kernel(x_ref, out_ref, *, beta, mean_start, mean_step, num_rbf):
    # x_ref:   (2, tile_e) f32 — row 0 = exp(-dist), row 1 = soft_cutoff(dist)
    # out_ref: (num_rbf, tile_e) f32 — edges along the 128-lane axis (lane-dense stores)
    expd = x_ref[0:1, :]                                   # (1, tile_e)
    sc = x_ref[1:2, :]                                     # (1, tile_e)

    # means = linspace(start, end, num_rbf) as a (num_rbf, 1) column (lane-broadcast).
    k = jax.lax.broadcasted_iota(jnp.int32, (num_rbf, 1), 0).astype(jnp.float32)
    means = mean_start + mean_step * k                     # (num_rbf, 1)

    diff = expd - means                                    # (num_rbf, tile_e)
    # Single transcendental per output element (EUP); everything else is VPU.
    out_ref[...] = sc * jnp.exp((-beta) * (diff * diff))


def rbf_emb_forward(dist, num_rbf: int, soft_cutoff_upper: float,
                    *, max_block_cols: int = 32768):
    """Pallas implementation of rbf_emb.forward: (E,) float -> (E, num_rbf) float32."""
    mean_start, mean_step, beta = _rbf_constants(num_rbf, soft_cutoff_upper)
    upper = float(soft_cutoff_upper)

    E = int(dist.shape[0])
    d = dist.astype(jnp.float32)

    # Per-edge transcendentals hoisted out of the num_rbf-expanded domain: computed
    # once per edge here (lane-dense (E,) layout), so the kernel's EUP work is ~1 op
    # per output element instead of 3.
    expd = jnp.exp(-d)
    sc = 0.5 * (jnp.cos(d * (math.pi / upper)) + 1.0)
    sc = sc * (d < upper).astype(jnp.float32)      # multiply-by-mask: matches torch (NaN propagates)

    # One combined lane-dense input -> one contiguous DMA stream, no lane-padded buffer.
    x = jnp.stack([expd, sc], axis=0)              # (2, E)

    # Column tiling: output block (num_rbf, tile_e).  Budget ~4 MiB per output buffer
    # (x2 double-buffered) -> ~8.5 MiB total VMEM, safe on v5e/v6e/v7x defaults.
    out_budget = 4 << 20
    tile_e = (out_budget // (num_rbf * 4)) // 128 * 128
    tile_e = max(128, min(tile_e, max_block_cols, _round_up(E, 128)))
    # v7x has 2 TensorCores: keep the ("parallel",) grid at >= 2 steps when E allows it.
    if _round_up(E, 128) > 128 and pl.cdiv(E, tile_e) < 2:
        tile_e = max(128, _round_up(pl.cdiv(E, 2), 128))
    grid = (pl.cdiv(E, tile_e),)

    kernel = functools.partial(
        _rbf_kernel,
        beta=float(beta),
        mean_start=float(mean_start),
        mean_step=float(mean_step),
        num_rbf=num_rbf,
    )

    cost = pl.CostEstimate(
        flops=int(5 * E * num_rbf),
        transcendentals=int(E * num_rbf),
        bytes_accessed=int(4 * (E * num_rbf + 2 * E)),
    )

    out_t = pl.pallas_call(
        kernel,
        out_shape=jax.ShapeDtypeStruct((num_rbf, E), jnp.float32),
        grid_spec=pltpu.PrefetchScalarGridSpec(
            num_scalar_prefetch=0,
            grid=grid,
            in_specs=[pl.BlockSpec((2, tile_e), lambda i: (0, i))],
            out_specs=pl.BlockSpec((num_rbf, tile_e), lambda i: (0, i)),
        ),
        compiler_params=pltpu.CompilerParams(
            dimension_semantics=("parallel",)),
        cost_estimate=cost,
    )(x)

    # Return the module's logical (E, num_rbf) layout.
    # TODO(synk): fuse the downstream projection / consume (num_rbf, E) directly to
    # avoid this relayout on the mem-bound path.
    return out_t.T


def _reference(dist, num_rbf, soft_cutoff_upper):
    """Pure-JAX reference mirroring the PyTorch forward."""
    mean_start, mean_step, beta = _rbf_constants(num_rbf, soft_cutoff_upper)
    upper = float(soft_cutoff_upper)
    means = mean_start + mean_step * jnp.arange(num_rbf, dtype=jnp.float32)
    d = dist.astype(jnp.float32)[:, None]
    sc = 0.5 * (jnp.cos(d * math.pi / upper) + 1.0)
    sc = sc * (d < upper).astype(jnp.float32)
    return sc * jnp.exp(-beta * jnp.square(jnp.exp(-d) - means))


if __name__ == "__main__":
    num_rbf = 32
    soft_cutoff_upper = 5.0
    num_edges = 200  # not a multiple of 128 -> exercises a 2-step grid + ragged block

    key = jax.random.PRNGKey(0)
    # Distances in [0, ~6] so some fall past the cutoff.
    dist = jax.random.uniform(key, (num_edges,), jnp.float32,
                              minval=0.0, maxval=6.0)

    fwd = jax.jit(rbf_emb_forward,
                  static_argnames=("num_rbf", "soft_cutoff_upper", "max_block_cols"))
    out = fwd(dist, num_rbf=num_rbf, soft_cutoff_upper=soft_cutoff_upper)
    out = jax.block_until_ready(out)

    ref = _reference(dist, num_rbf, soft_cutoff_upper)
    assert out.shape == (num_edges, num_rbf), out.shape
    max_err = float(jnp.max(jnp.abs(out - ref)))
    assert jnp.allclose(out, ref, atol=1e-5, rtol=1e-5), f"max err {max_err}"

    print("KERNEL_OK")
</pallas_src>

<mosaic_0001>
module attributes {stable_mosaic.version = 11 : i64} {
  func.func @_rbf_kernel(%arg0: i32, %arg1: memref<2x128xf32, #tpu.memory_space<vmem>>, %arg2: memref<32x128xf32, #tpu.memory_space<vmem>>) attributes {dimension_semantics = [#tpu.dimension_semantics<parallel>], iteration_bounds = array<i64: 2>, scalar_prefetch = 0 : i64, scratch_operands = 0 : i64, tpu.core_type = #tpu.core_type<tc>, window_params = [{transform_indices = @transform_0, window_bounds = array<i64: 2, 128>}, {transform_indices = @transform_1, window_bounds = array<i64: 32, 128>}]} {
    %c0 = arith.constant 0 : index
    %c0_0 = arith.constant 0 : index
    %0 = vector.load %arg1[%c0, %c0_0] : memref<2x128xf32, #tpu.memory_space<vmem>>, vector<1x128xf32>
    %c1 = arith.constant 1 : index
    %c0_1 = arith.constant 0 : index
    %1 = vector.load %arg1[%c1, %c0_1] : memref<2x128xf32, #tpu.memory_space<vmem>>, vector<1x128xf32>
    %2 = tpu.iota {dimensions = array<i32: 0>} : vector<32x1xi32>
    %3 = arith.sitofp %2 : vector<32x1xi32> to vector<32x1xf32>
    %cst = arith.constant 0.0320407115 : f32
    %4 = vector.broadcast %cst : f32 to vector<32x1xf32>
    %5 = arith.mulf %4, %3 : vector<32x1xf32>
    %cst_2 = arith.constant 0.006737947 : f32
    %6 = vector.broadcast %cst_2 : f32 to vector<32x1xf32>
    %7 = arith.addf %6, %5 : vector<32x1xf32>
    %8 = vector.broadcast %0 : vector<1x128xf32> to vector<32x128xf32>
    %9 = vector.broadcast %7 : vector<32x1xf32> to vector<32x128xf32>
    %10 = arith.subf %8, %9 : vector<32x128xf32>
    %11 = arith.mulf %10, %10 : vector<32x128xf32>
    %cst_3 = arith.constant -259.485016 : f32
    %12 = vector.broadcast %cst_3 : f32 to vector<32x128xf32>
    %13 = arith.mulf %12, %11 : vector<32x128xf32>
    %14 = math.exp %13 : vector<32x128xf32>
    %15 = vector.broadcast %1 : vector<1x128xf32> to vector<32x128xf32>
    %16 = arith.mulf %15, %14 : vector<32x128xf32>
    %c0_4 = arith.constant 0 : index
    %c0_5 = arith.constant 0 : index
    %17 = vector.load %arg2[%c0_4, %c0_5] : memref<32x128xf32, #tpu.memory_space<vmem>>, vector<32x128xf32>
    tpu.vector_store %arg2[%c0_4, %c0_5], %16 {strides = array<i32>} : memref<32x128xf32, #tpu.memory_space<vmem>>, vector<32x128xf32>,
    return
  }
  func.func @transform_0(%arg0: i32) -> (i32, i32) {
    %c0_i32 = arith.constant 0 : i32
    %c0_i32_0 = arith.constant 0 : i32
    return %c0_i32, %arg0 : i32, i32
  }
  func.func @transform_1(%arg0: i32) -> (i32, i32) {
    %c0_i32 = arith.constant 0 : i32
    %c0_i32_0 = arith.constant 0 : i32
    return %c0_i32, %arg0 : i32, i32
  }
}

</mosaic_0001>

<bundles_post_ra>
// kernel: rbf_emb_forward.1
= control target key start
LH: loop header
LB: loop body
LE: loop exit
PB: predicated region body
PF: predicated region fallthrough
CT: control target
= control target key end

     0   :  { %6 = vsyncpa [#allocation3], 0  ;;  %s486_s0 = inlined_call_operand.vmem [shape: f32[2,200], index: 0, kind: input, shape index: {}]   ;;  %s487_s1 = inlined_call_operand.hbm [shape: f32[32,200], index: 1, kind: output, shape index: {}]  }
   0x1   :  { %8 = vsyncpa [#allocation3 + $0x1], 0  ;;  %s380_s6 = smov 0   ;;  %s382_s7 = smov 0  }
   0x2   :  { %s384_s8 = smov 0   ;;  %s386_s9 = smov 0  }
   0x3 LB: > { %s401_s10 = sadd.s32 4294967295, %s364_s9   ;;  %s242_s11 = sadd.s32 4294967294, %s364_s9   ;;  %s364_s9 = sphi %s386_s9, %s493_s9   ;;  %s360_s8 = sphi %s384_s8, %s492_s8   ;;  %s356_s7 = sphi %s382_s7, %s491_s7   ;;  %s352_s6 = sphi %s380_s6, %s490_s6  }
   0x4   : > { %s405_s12 = sadd.s32 1, %s364_s9   ;;  %s47_s13 = sadd.s32 1, %s360_s8 }
   0x5   : > { %s44_s14 = ssub.s32 %s364_s9, %s405_s12  ;;  %p57_p0 = scmp.ne.s32.totalorder %s360_s8, %s356_s7 }
   0x6   : > { %p45_p1 = scmp.eq.s32.totalorder %s44_s14, 0  ;;  %p58_p2 = scmp.eq.s32.totalorder %s401_s10, 1 }
   0x7   : > { %p63_p3 = scmp.ne.s32.totalorder %s356_s7, %s352_s6  ;;  %p64_p4 = scmp.eq.s32.totalorder %s242_s11, 1 }
   0x8   : > { %s416_s15 = scalar_select %p45_p1, %s360_s8, %s47_s13  }
   0x9   : > { %p418_p5 = por %p58_p2, %p57_p0  ;;  %p422_p6 = por %p64_p4, %p63_p3 }
   0xa   : > { %p245_p7 = scmp.ge.s32.totalorder %s364_s9, 1  ;;  %p89_p8 = scmp.lt.s32.totalorder %s364_s9, 3 }
   0xc   : > { %p90_p9 = pnand %p245_p7, %p89_p8 }
   0xd   : > { %p108_p10 = scmp.lt.s32.totalorder (!%p90_p9), %s401_s10, 1  ;;  %s105_s23 = sand.u32 (!%p90_p9), 1, %s356_s7  }
   0xe   : > { %93 = sbr.rel (%p90_p9) target bundleno = 72 (0x48), region = 24  ;;  %s246_s24 = sshll.u32 (!%p90_p9), %s105_s23, 5 }
   0xf   : > { %s251_s25 = sshll.u32 (!%p90_p9), %s401_s10, 7  ;;  %s107_s26 = scalar_lea.vmem (!%p90_p9), [#allocation2], %s246_s24 }
  0x10   : > { %s180_s27 = sshll.u32 (!%p90_p9), %s107_s26, 4  ;;  %s442_s30 = scalar_lea.hbm (!%p90_p9), %s487_s1, %s251_s25  ;;  %s444_s27 = int_to_ptr.vmem [resolvable:$true] %s180_s27 }
  0x11   : > { %s446_s2 = scalar_lea.sflag (!%p90_p9), [#allocation3], %s105_s23  ;;  %s304_s3 = scalar_lea.vmem (!%p90_p9), %s444_s27, 512 }
  0x12   : > { %p305_p11 = scmp.ne.s32.totalorder (!%p90_p9), %s444_s27, %s304_s3  ;;  %s366_s4 = smov (!%p90_p9), [#allocation2]  }
  0x13   : > { %v114_v0 = vlaneseq  ;;  %s109_s18 = scalar_select %p108_p10, %s401_s10, 1 }
  0x14   : > { %p306_p12 = pnand %p305_p11, %p418_p5  ;;  %s308_s5 = sshll.u32 %s366_s4, 4  ;;  %s309_s5 = int_to_ptr.vmem [resolvable:$false] %s308_s5 }
  0x15   : > { %v115_v1 = vshrl.u32 %v114_v0, 7  ;;  %s247_s19 = sshll.u32 %s109_s18, 1  ;;  %s310_s10 = scalar_lea.vmem %s309_s5, 1024 }
  0x16   : > { %s433_s22 = scalar_lea.vmem %s486_s0, %s247_s19  ;;  %p307_p13 = pneg %p306_p12 }
  0x17   : > { %v116_v2 = vadd.s32 8, %v115_v1  ;;  %v117_v3 = vadd.s32 16, %v115_v1  ;;  %v118_v4 = vadd.s32 24, %v115_v1  ;;  %v119_v5 = vcvt.s32.f32 %v115_v1  ;;  %v248_v10 = vld [vmem:[%s433_s22] ss:$0 sm:$0xff]  ;;  %p311_p0 = scmp.lt.s32.totalorder %s444_s27, %s309_s5  ;;  %p312_p1 = scmp.lt.s32.totalorder %s310_s10, %s304_s3 }
  0x18   : > { %v249_v34 = vld [vmem:[%s433_s22 + $0x1] ss:$0 sm:$0xff] }
  0x19   : > { %v120_v6 = vcvt.s32.f32 %v116_v2  ;;  %v121_v7 = vcvt.s32.f32 %v117_v3  ;;  %v122_v8 = vcvt.s32.f32 %v118_v4  ;;  %v123_v9 = vmul.f32 0.03204071, %v119_v5  ;;  %p313_p2 = por %p312_p1, %p311_p0 }
  0x1b   : > { %v124_v11 = vmul.f32 0.03204071, %v120_v6  ;;  %v125_v12 = vmul.f32 0.03204071, %v121_v7  ;;  %v126_v13 = vmul.f32 0.03204071, %v122_v8  ;;  %p314_p3 = pnand %p313_p2, %p307_p13 }
  0x1c   : > { %v127_v14 = vadd.f32 0.006737947, %v123_v9 }
  0x1d   : > { %v128_v15 = vadd.f32 0.006737947, %v124_v11  ;;  %v129_v16 = vadd.f32 0.006737947, %v125_v12  ;;  %v130_v17 = vadd.f32 0.006737947, %v126_v13 }
  0x1e   : > { %v135_v18 = vsub.f32 %v248_v10, %v127_v14 }
  0x1f   : > { %v136_v19 = vsub.f32 %v248_v10, %v128_v15  ;;  %v137_v20 = vsub.f32 %v248_v10, %v129_v16  ;;  %v138_v21 = vsub.f32 %v248_v10, %v130_v17 }
  0x20   : > { %v139_v22 = vmul.f32 %v135_v18, %v135_v18 }
  0x21   : > { %v140_v23 = vmul.f32 %v136_v19, %v136_v19  ;;  %v141_v24 = vmul.f32 %v137_v20, %v137_v20  ;;  %v142_v25 = vmul.f32 %v138_v21, %v138_v21 }
  0x22   : > { %v143_v26 = vmul.f32 -259.48502, %v139_v22 }
  0x23   : > { %v144_v27 = vmul.f32 -259.48502, %v140_v23  ;;  %v145_v28 = vmul.f32 -259.48502, %v141_v24  ;;  %v146_v29 = vmul.f32 -259.48502, %v142_v25 }
  0x24   : > { %v147_v30 = vmul.f32 1.442695, %v143_v26 }
  0x25   : > { %v149_v31 = vmul.f32 1.442695, %v144_v27  ;;  %v151_v32 = vmul.f32 1.442695, %v145_v28  ;;  %v153_v33 = vmul.f32 1.442695, %v146_v29 }
  0x26   : > { %296 = vpow2.f32 %v147_v30 }
  0x27   : > { %298 = vpow2.f32 %v149_v31 }
  0x28   : > { %300 = vpow2.f32 %v151_v32 }
  0x29   : > { %302 = vpow2.f32 %v153_v33 }
  0x33   : > { %v297_v35 = vpop.eup %296 }
  0x34   : > { %v299_v36 = vpop.eup %298  ;;  %v159_v37 = vmul.f32 %v297_v35, %v249_v34 }
  0x35   : > { %v301_v38 = vpop.eup %300  ;;  %v160_v39 = vmul.f32 %v299_v36, %v249_v34 }
  0x36   : > { %v303_v40 = vpop.eup %302  ;;  %163 = vst [vmem:[%s107_s26] sm:$0xff] %v159_v37  ;;  %v161_v41 = vmul.f32 %v301_v38, %v249_v34 }
  0x37   : > { %164 = vst [vmem:[%s107_s26 + $0x8] sm:$0xff] %v160_v39  ;;  %v162_v42 = vmul.f32 %v303_v40, %v249_v34 }
  0x38   : > { %165 = vst [vmem:[%s107_s26 + $0x10] sm:$0xff] %v161_v41 }
  0x39   : > { %166 = vst [vmem:[%s107_s26 + $0x18] sm:$0xff] %v162_v42 }
  0x3a   : > { %317 = shalt.err (!%p314_p3)
}
  0x3b   : > { %s318_s11 = scalar_lea.hbm %s442_s30, 512  ;;  %s322_s18 = scalar_lea.hbm %s487_s1, 1024 }
  0x3c   : > { %p319_p4 = scmp.ne.s32.totalorder %s442_s30, %s318_s11  ;;  %p323_p9 = scmp.lt.s32.totalorder %s442_s30, %s487_s1 }
  0x3d   : > { %p324_p10 = scmp.lt.s32.totalorder %s322_s18, %s318_s11 }
  0x3e   : > { %p320_p7 = pnand %p319_p4, %p418_p5 }
  0x3f   : > { %p325_p11 = por %p324_p10, %p323_p9 }
  0x40   : > { %p321_p8 = pneg %p320_p7 }
  0x42   : > { %p326_p12 = pnand %p325_p11, %p321_p8 }
  0x44   : > { %329 = shalt.err (!%p326_p12)
}
  0x45   : > { %s367_s21 = smov 128   ;;  %s368_s22 = smov 256  }
  0x46   : > { %s369_s23 = smov 8  }
  0x47   : > { %254 = dma.vmem_to_hbm [thread:$0]  (%p418_p5), %s444_s27, 512, %s442_s30, %s446_s2, %s367_s21, %s368_s22, %s369_s23  }
  0x48 PF: > { %p260_p13 = scmp.ge.s32.totalorder %s364_s9, 2  ;;  %s195_s24 = sand.u32 1, %s352_s6  }
  0x49   : > { %s196_s25 = scalar_lea.sflag [#allocation3], %s195_s24 }
  0x4a   : > { %p257_p0 = pnand %p260_p13, %p422_p6 }
  0x4c   : > { %p258_p1 = pneg %p257_p0 }
  0x4e   : > { %347 = dma.done.wait (%p258_p1), %s196_s25, 512  }
  0x4f   : > { %349 = vsyncadd (%p258_p1), %s196_s25, 4294966784  ;;  %p11_p2 = scmp.ge.s32.totalorder %s405_s12, 4   ;;  %s490_s6 = smov %s356_s7 }
  0x50   : > { %s491_s7 = smov %s360_s8  ;;  %s492_s8 = smov %s416_s15 }
  0x51   : > { %s493_s9 = smov %s405_s12  ;;  %13 = sbr.rel (!%p11_p2) target bundleno = 3 (0x3), region = 59 }
  0x56   :  { %201 = vsyncpa [#allocation3], 1 }
  0x57   :  { %203 = vsyncpa [#allocation3 + $0x1], 1 }

</bundles_post_ra>
